<compile_context>
chip_gen: v7x
topology: tpu7x:2x2x1
jax: 0.10.0
libtpu: 0.0.40
codegen_flags: <defaults>
</compile_context>

<pallas_src>
import jax
import jax.numpy as jnp
from jax import lax
from jax.experimental import pallas as pl
from jax.experimental.pallas import tpu as pltpu


def _shift_kernel(shift_ref, x_ref, sel_ref, o_ref):
    # shift_ref: (C, 1) f32  per-channel shift
    # x_ref:     (C, N) f32  flattened image, N = padded H*W (multiple of 128)
    # sel_ref:   (1, N) f32  {0,1} mask (mask == 1), zero in padded tail
    # o_ref:     (C, N)      output (HBM buffer aliased with x)
    x = x_ref[...].astype(jnp.float32)                           # (C, N)
    sel = sel_ref[...].astype(jnp.float32)                       # (1, N)

    cnt = jnp.sum(sel)                                           # selected pixels

    # Masked per-channel sums on the MXU: contract over the lane (N) axis.
    sums = jnp.einsum("cn,kn->ck", x, sel,
                      preferred_element_type=jnp.float32,
                      precision=lax.Precision.HIGHEST)           # (C, 1)
    mean = sums / cnt                                            # (C, 1)

    # Two-pass (centered) second moment, also on the MXU. d is masked, so
    # contracting d*d with sel yields sum_{sel==1} (x - mean)^2 per channel.
    d = (x - mean) * sel                                         # (C, N)
    sumsq = jnp.einsum("cn,kn->ck", d * d, sel,
                       preferred_element_type=jnp.float32,
                       precision=lax.Precision.HIGHEST)          # (C, 1)

    # torch.std default: unbiased (Bessel's correction, ddof=1).
    # cnt <= 1 yields NaN/Inf, matching torch.std on empty/singleton selections.
    std = jnp.sqrt(sumsq / (cnt - jnp.float32(1.0)))             # (C, 1)

    o_ref[...] = (x + std * shift_ref[...]).astype(o_ref.dtype)


def random_intensity_shift(x, y, shifts):
    """x: (C, H, W) float, y: (K, H, W) one-hot float, shifts: (C,) float."""
    C, H, W = x.shape
    N = H * W
    Np = ((N + 127) // 128) * 128                 # lane-dense padding

    # Hoisted out of the kernel: one mask reduction shared by all channels.
    mask = jnp.sum(y, axis=0)                                    # (H, W)
    sel = (mask == 1.0).astype(jnp.float32).reshape(1, N)        # (1, H*W)

    x_flat = x.reshape(C, N).astype(jnp.float32)
    if Np != N:
        x_flat = jnp.pad(x_flat, ((0, 0), (0, Np - N)))
        sel = jnp.pad(sel, ((0, 0), (0, Np - N)))   # padded pixels: sel == 0

    shifts2d = shifts.astype(jnp.float32).reshape(C, 1)

    out_flat = pl.pallas_call(
        _shift_kernel,
        out_shape=jax.ShapeDtypeStruct((C, Np), jnp.float32),
        grid=(1,),                                 # single step: all channels at once
        in_specs=[
            pl.BlockSpec((C, 1), lambda i: (0, 0)),    # shifts
            pl.BlockSpec((C, Np), lambda i: (0, 0)),   # x, lane-dense
            pl.BlockSpec((1, Np), lambda i: (0, 0)),   # sel mask
        ],
        out_specs=pl.BlockSpec((C, Np), lambda i: (0, 0)),
        input_output_aliases={1: 0},               # write back into x's buffer
        compiler_params=pltpu.CompilerParams(
            dimension_semantics=("arbitrary",)),
    )(shifts2d, x_flat, sel)

    out = out_flat[:, :N].reshape(C, H, W).astype(x.dtype)
    return out, y


def _reference(x, y, shifts):
    # pure-JAX reference mirroring the PyTorch loop
    mask = jnp.sum(y, axis=0)
    sel = mask == 1.0

    def per_channel(xc, s):
        cnt = jnp.sum(sel.astype(jnp.float32))
        mean = jnp.sum(jnp.where(sel, xc, 0.0)) / cnt
        d = jnp.where(sel, xc - mean, 0.0)
        std = jnp.sqrt(jnp.sum(d * d) / (cnt - 1.0))
        return xc + std * s

    return jax.vmap(per_channel)(x, shifts), y


if __name__ == "__main__":
    key = jax.random.PRNGKey(0)
    kx, kl, ks = jax.random.split(key, 3)

    C, K, H, W = 4, 3, 16, 16
    x = jax.random.normal(kx, (C, H, W), dtype=jnp.float32)

    # labels in {0,1,2,3}; 3 means "unlabeled" -> y.sum(0) == 0 there, else == 1
    labels = jax.random.randint(kl, (H, W), 0, K + 1)
    y = (jax.nn.one_hot(labels, K + 1, axis=0)[:K]).astype(jnp.float32)  # (K,H,W)

    # deterministic stand-in for random.uniform(shift_min, shift_max) per channel
    shifts = jax.random.uniform(ks, (C,), minval=-0.1, maxval=0.1,
                                dtype=jnp.float32)

    out_x, out_y = random_intensity_shift(x, y, shifts)
    out_x = jax.block_until_ready(out_x)

    ref_x, _ = _reference(x, y, shifts)
    assert out_x.shape == x.shape and out_y.shape == y.shape
    assert jnp.allclose(out_x, ref_x, rtol=1e-5, atol=1e-5)

    print("KERNEL_OK")
</pallas_src>

<mosaic_0001>
module attributes {stable_mosaic.version = 11 : i64} {
  func.func @_shift_kernel(%arg0: i32, %arg1: memref<4x1xf32, #tpu.memory_space<vmem>>, %arg2: memref<4x256xf32, #tpu.memory_space<vmem>>, %arg3: memref<1x256xf32, #tpu.memory_space<vmem>>, %arg4: memref<4x256xf32, #tpu.memory_space<vmem>>) attributes {dimension_semantics = [#tpu.dimension_semantics<arbitrary>], iteration_bounds = array<i64: 1>, scalar_prefetch = 0 : i64, scratch_operands = 0 : i64, tpu.core_type = #tpu.core_type<tc>, window_params = [{pipeline_mode = #tpu.pipeline_mode<synchronous>, transform_indices = @transform_0, window_bounds = array<i64: 4, 1>}, {pipeline_mode = #tpu.pipeline_mode<synchronous>, transform_indices = @transform_1, window_bounds = array<i64: 4, 256>}, {pipeline_mode = #tpu.pipeline_mode<synchronous>, transform_indices = @transform_2, window_bounds = array<i64: 1, 256>}, {pipeline_mode = #tpu.pipeline_mode<synchronous>, transform_indices = @transform_3, window_bounds = array<i64: 4, 256>}]} {
    %c0 = arith.constant 0 : index
    %c0_0 = arith.constant 0 : index
    %0 = vector.load %arg2[%c0, %c0_0] : memref<4x256xf32, #tpu.memory_space<vmem>>, vector<4x256xf32>
    %c0_1 = arith.constant 0 : index
    %c0_2 = arith.constant 0 : index
    %1 = vector.load %arg3[%c0_1, %c0_2] : memref<1x256xf32, #tpu.memory_space<vmem>>, vector<1x256xf32>
    %2 = vector.shape_cast %1 : vector<1x256xf32> to vector<1x1x256xf32>
    %cst = arith.constant dense<0.000000e+00> : vector<1xf32>
    %3 = vector.multi_reduction <add>, %2, %cst [1, 2] : vector<1x1x256xf32> to vector<1xf32>
    %4 = vector.shape_cast %3 : vector<1xf32> to vector<1x1x1xf32>
    %5 = vector.extract %4[0, 0, 0] : f32 from vector<1x1x1xf32>
    "tpu.trace_start"() <{level = 10 : i32, message = "cn,kn->ck"}> : () -> ()
    %cst_3 = arith.constant dense<0.000000e+00> : vector<4x1xf32>
    %6 = tpu.matmul %0, %1, %cst_3 {dimension_numbers = #tpu.dot_dimension_numbers<[1], [1], [0], [0], [0, 0, 1, 0], [], []>, precision = #tpu.contract_precision<fp32>} : vector<4x256xf32>, vector<1x256xf32>, vector<4x1xf32> -> vector<4x1xf32>
    "tpu.trace_stop"() : () -> ()
    %7 = vector.broadcast %5 : f32 to vector<4x1xf32>
    %8 = arith.divf %6, %7 : vector<4x1xf32>
    %9 = vector.broadcast %8 : vector<4x1xf32> to vector<4x256xf32>
    %10 = arith.subf %0, %9 : vector<4x256xf32>
    %11 = vector.broadcast %1 : vector<1x256xf32> to vector<4x256xf32>
    %12 = arith.mulf %10, %11 : vector<4x256xf32>
    %13 = arith.mulf %12, %12 : vector<4x256xf32>
    "tpu.trace_start"() <{level = 10 : i32, message = "cn,kn->ck"}> : () -> ()
    %cst_4 = arith.constant dense<0.000000e+00> : vector<4x1xf32>
    %14 = tpu.matmul %13, %1, %cst_4 {dimension_numbers = #tpu.dot_dimension_numbers<[1], [1], [0], [0], [0, 0, 1, 0], [], []>, precision = #tpu.contract_precision<fp32>} : vector<4x256xf32>, vector<1x256xf32>, vector<4x1xf32> -> vector<4x1xf32>
    "tpu.trace_stop"() : () -> ()
    %cst_5 = arith.constant 1.000000e+00 : f32
    %15 = arith.subf %5, %cst_5 : f32
    %16 = vector.broadcast %15 : f32 to vector<4x1xf32>
    %17 = arith.divf %14, %16 : vector<4x1xf32>
    %18 = math.sqrt %17 : vector<4x1xf32>
    %c0_6 = arith.constant 0 : index
    %c0_7 = arith.constant 0 : index
    %19 = vector.load %arg1[%c0_6, %c0_7] : memref<4x1xf32, #tpu.memory_space<vmem>>, vector<4x1xf32>
    %20 = arith.mulf %18, %19 : vector<4x1xf32>
    %21 = vector.broadcast %20 : vector<4x1xf32> to vector<4x256xf32>
    %22 = arith.addf %0, %21 : vector<4x256xf32>
    %c0_8 = arith.constant 0 : index
    %c0_9 = arith.constant 0 : index
    %23 = vector.load %arg4[%c0_8, %c0_9] : memref<4x256xf32, #tpu.memory_space<vmem>>, vector<4x256xf32>
    tpu.vector_store %arg4[%c0_8, %c0_9], %22 {strides = array<i32>} : memref<4x256xf32, #tpu.memory_space<vmem>>, vector<4x256xf32>,
    return
  }
  func.func @transform_0(%arg0: i32) -> (i32, i32) {
    %c0_i32 = arith.constant 0 : i32
    %c0_i32_0 = arith.constant 0 : i32
    %c0_i32_1 = arith.constant 0 : i32
    return %c0_i32, %c0_i32_0 : i32, i32
  }
  func.func @transform_1(%arg0: i32) -> (i32, i32) {
    %c0_i32 = arith.constant 0 : i32
    %c0_i32_0 = arith.constant 0 : i32
    %c0_i32_1 = arith.constant 0 : i32
    return %c0_i32, %c0_i32_0 : i32, i32
  }
  func.func @transform_2(%arg0: i32) -> (i32, i32) {
    %c0_i32 = arith.constant 0 : i32
    %c0_i32_0 = arith.constant 0 : i32
    %c0_i32_1 = arith.constant 0 : i32
    return %c0_i32, %c0_i32_0 : i32, i32
  }
  func.func @transform_3(%arg0: i32) -> (i32, i32) {
    %c0_i32 = arith.constant 0 : i32
    %c0_i32_0 = arith.constant 0 : i32
    %c0_i32_1 = arith.constant 0 : i32
    return %c0_i32, %c0_i32_0 : i32, i32
  }
}

</mosaic_0001>

<bundles_post_ra>
// kernel: tpu_custom_call.1
= control target key start
LH: loop header
LB: loop body
LE: loop exit
PB: predicated region body
PF: predicated region fallthrough
CT: control target
= control target key end

     0   :  { %8 = vsyncpa [#allocation3], 0  ;;  %s257_s0 = inlined_call_operand.vmem [shape: f32[4,1], index: 0, kind: input, shape index: {}]   ;;  %s258_s1 = inlined_call_operand.hbm [shape: f32[4,256], index: 1, kind: input, shape index: {}, may-alias: {1,3}]   ;;  %s259_s2 = inlined_call_operand.vmem [shape: f32[1,256], index: 2, kind: input, shape index: {}]   ;;  %s260_s3 = inlined_call_operand.hbm [shape: f32[4,256], index: 3, kind: output, shape index: {}, may-alias: {1,3}]  }
   0x1   :  { %9 = vsyncpa [#allocation4], 0  ;;  %s194_s12 = smov [#allocation2]   ;;  %s146_s16 = scalar_lea.hbm %s258_s1, 128 }
   0x2   :  { %s18_s13 = sshll.u32 %s194_s12, 4  ;;  %p147_p0 = scmp.ne.s32.totalorder %s258_s1, %s146_s16  ;;  %s19_s13 = int_to_ptr.vmem [resolvable:$true] %s18_s13 }
   0x3   :  { %p150_p1 = scmp.lt.u32.totalorder %s146_s16, %s258_s1 }
   0x5   :  { %p152_p2 = pnand %p150_p1, %p147_p0 }
   0x7   :  { %155 = shalt.err (!%p152_p2)
}
   0x8   :  { %s156_s21 = scalar_lea.vmem %s19_s13, 128  ;;  %p161_p4 = scmp.lt.s32.totalorder %s19_s13, %s19_s13 }
   0x9   :  { %p157_p3 = scmp.ne.s32.totalorder %s19_s13, %s156_s21  ;;  %p162_p5 = scmp.lt.s32.totalorder %s156_s21, %s156_s21 }
   0xb   :  { %p163_p6 = por %p162_p5, %p161_p4 }
   0xd   :  { %p164_p7 = pnand %p163_p6, %p157_p3 }
   0xf   :  { %167 = shalt.err (!%p164_p7)
}
  0x10   :  { %21 = dma.hbm_to_vmem [thread:$0]  %s258_s1, 128, %s19_s13, [#allocation3]  }
  0x11   :  { %190 = dma.done.wait [#allocation3], 128  }
  0x12   :  { %191 = vsyncadd [#allocation3], 4294967168  ;;  %v30_v0 = vlaneseq  ;;  %v28_v4 = vld [vmem:[%s259_s2] sm:$0x3]  ;;  %vm40_vm0 = vcmask 1040384   ;;  %vm59_vm1 = vcmask 1043456  }
  0x13   :  { %v233_v7 = vld [vmem:[#allocation2] sm:$0xff]  ;;  %v195_v25 = vmov 839922192   ;;  %v196_v41 = vmov 0   ;;  %s197_s28 = smov [#allocation5]  }
  0x14   :  { %v31_v1 = vshrl.u32 %v30_v0, 7  ;;  %v70_v26 = vunpack.c.l.s4 %v195_v25  ;;  %138 = vset.pattern.permute.xlu1 %v196_v41  ;;  %139 = vset.pattern.permute.xlu0 %v196_v41  ;;  %v100_v49 = vld [vmem:[%s257_s0] sm:$0xf]  ;;  %s122_s29 = sshll.u32 %s197_s28, 4  ;;  %s123_s29 = int_to_ptr.vmem [resolvable:$true] %s122_s29 }
  0x15   :  { %s168_s30 = scalar_lea.vmem %s123_s29, 128  ;;  %p173_p9 = scmp.lt.s32.totalorder %s123_s29, %s123_s29 }
  0x16   :  { %v32_v2 = vsub.s32 0, %v31_v1  ;;  %v36_v3 = vsub.s32 1, %v31_v1  ;;  %v71_v27 = vunpack.c.0.s8 %v70_v26  ;;  %p169_p8 = scmp.ne.s32.totalorder %s123_s29, %s168_s30  ;;  %p174_p10 = scmp.lt.s32.totalorder %s168_s30, %s168_s30 }
  0x18   :  { %v33_v5 = vrot.slane %v28_v4, %v32_v2  ;;  %v37_v6 = vrot.slane %v28_v4, %v36_v3  ;;  %v74_v29 = vsub.s32 %v71_v27, %v31_v1  ;;  %p175_p11 = por %p174_p10, %p173_p9 }
  0x1a   :  { %v41_v8 = vsel %vm40_vm0, %v33_v5, 0.0  ;;  %v42_v9 = vsel %vm40_vm0, %v37_v6, 0.0  ;;  %v53_v10 = vcombine.low %v33_v5, %v37_v6  ;;  %p176_p12 = pnand %p175_p11, %p169_p8 }
  0x1b   :  { %v43_v11 = vadd.f32 %v42_v9, %v41_v8 }
  0x1c   :  { %v55_v12 = vmul.f32 %v53_v10, %v233_v7 }
  0x1d   :  { %44 = vadd.xlane.f32.xlu0 %v43_v11 }
  0x1e   :  { %v57_v13 = vcombine.high %v55_v12, %v55_v12  ;;  %v60_v14 = vsel %vm59_vm1, %v55_v12, 0.0 }
  0x20   :  { %v61_v15 = vsel %vm59_vm1, %v57_v13, 0.0 }
  0x21   :  { %v62_v16 = vadd.f32 %v61_v15, %v60_v14 }
  0x23   :  { %63 = vadd.xlane.f32.xlu0 %v62_v16 }
  0xaa   :  { %v45_v17 = vpop.xlane.xlu0 %44 }
  0xab   :  { %v46_v18 = vrot.slane %v45_v17, 4 }
  0xad   :  { %v47_v19 = vadd.f32 %v46_v18, %v45_v17 }
  0xaf   :  { %v48_v20 = vrot.slane %v47_v19, 2 }
  0xb0   :  { %v64_v28 = vpop.xlane.xlu0 %63 }
  0xb1   :  { %v49_v21 = vadd.f32 %v48_v20, %v47_v19 }
  0xb3   :  { %v50_v22 = vrot.slane %v49_v21, 1 }
  0xb5   :  { %v51_v23 = vadd.f32 %v50_v22, %v49_v21 }
  0xb7   :  { %132 = vpush %v51_v23 }
  0xe8   :  { %s133_s1 = spop %132 }
  0xe9   :  { %v65_v24 = vstv %s133_s1  ;;  %s131_s2 = sadd.f32 -1.0, %s133_s1 }
  0xea   :  { %140 = vrcp.f32 %v65_v24 }
  0xeb   :  { %v90_v42 = vstv %s131_s2 }
  0xec   :  { %142 = vrcp.f32 %v90_v42 }
  0xf4   :  { %v141_v30 = vpop.eup %140 }
  0xf5   :  { %v67_v31 = vmul.f32 %v141_v30, %v64_v28 }
  0xf6   :  { %v143_v43 = vpop.eup %142 }
  0xf7   :  { %v75_v32 = vrot.slane %v67_v31, %v74_v29 }
  0xf9   :  { %v77_v33 = vsub.f32 %v233_v7, %v75_v32 }
  0xfb   :  { %v78_v34 = vmul.f32 %v77_v33, %v53_v10 }
  0xfd   :  { %v79_v35 = vmul.f32 %v78_v34, %v78_v34 }
  0xff   :  { %v80_v36 = vmul.f32 %v79_v35, %v53_v10 }
 0x101   :  { %v82_v37 = vcombine.high %v80_v36, %v80_v36  ;;  %v84_v38 = vsel %vm59_vm1, %v80_v36, 0.0 }
 0x103   :  { %v85_v39 = vsel %vm59_vm1, %v82_v37, 0.0 }
 0x104   :  { %v86_v40 = vadd.f32 %v85_v39, %v84_v38 }
 0x106   :  { %87 = vadd.xlane.f32.xlu1 %v86_v40 }
 0x193   :  { %v88_v44 = vpop.xlane.xlu1 %87 }
 0x194   :  { %v92_v45 = vmul.f32 %v143_v43, %v88_v44 }
 0x196   :  { %144 = vrsqrt.f32 %v92_v45  ;;  %vm95_vm2 = vcmp.eq.f32.partialorder %v92_v45, inf  ;;  %v98_v48 = vand.u32 2147483648, %v92_v45  ;;  %vm97_vm3 = vcmp.eq.f32.partialorder %v92_v45, 0.0 }
 0x1a0   :  { %v145_v46 = vpop.eup %144 }
 0x1a1   :  { %v94_v47 = vmul.f32 %v145_v46, %v92_v45 }
 0x1a3   :  { %v96_v50 = vsel %vm95_vm2, %v92_v45, %v94_v47 }
 0x1a4   :  { %v99_v51 = vsel %vm97_vm3, %v98_v48, %v96_v50 }
 0x1a5   :  { %v101_v52 = vmul.f32 %v100_v49, %v99_v51 }
 0x1a7   :  { %104 = vperm.xlu1 %138, %v101_v52  }
 0x226   :  { %v105_v53 = vpop.permute.xlu1 %104 }
 0x227   :  { %v112_v54 = vrot.slane %v105_v53, %v74_v29 }
 0x229   :  { %v114_v55 = vadd.f32 %v112_v54, %v233_v7 }
 0x22b   :  { %115 = vst [vmem:[#allocation5] sm:$0xff] %v114_v55 }
 0x22c   :  { %179 = shalt.err (!%p176_p12)
}
 0x22d   :  { %s180_s5 = scalar_lea.hbm %s260_s3, 128 }
 0x22e   :  { %p181_p13 = scmp.ne.s32.totalorder %s260_s3, %s180_s5  ;;  %p184_p0 = scmp.lt.u32.totalorder %s180_s5, %s260_s3 }
 0x230   :  { %p186_p1 = pnand %p184_p0, %p181_p13 }
 0x232   :  { %189 = shalt.err (!%p186_p1)
}
 0x233   :  { %125 = dma.vmem_to_hbm [thread:$0]  %s123_s29, 128, %s260_s3, [#allocation4]  }
 0x234   :  { %192 = dma.done.wait [#allocation4], 128  }
 0x235   :  { %193 = vsyncadd [#allocation4], 4294967168 }
 0x236   :  { %129 = vsyncpa [#allocation3], 1 }
 0x237   :  { %130 = vsyncpa [#allocation4], 1 }

</bundles_post_ra>
